<compile_context>
chip_gen: v7x
topology: tpu7x:2x2x1
jax: 0.10.0
libtpu: 0.0.40
codegen_flags: <defaults>
</compile_context>

<pallas_src>
import functools

import jax
import jax.numpy as jnp
from jax import lax
from jax.experimental import pallas as pl
from jax.experimental.pallas import tpu as pltpu

_LANES = 128


def _round_up(x, m):
    return ((x + m - 1) // m) * m


def _bdq_kernel(x_ref, w1_ref, b1_ref, w2_ref, b2_ref, wh_ref, bh_ref, q_ref,
                *, branch_sizes):
    """Fused 2-layer MLP + fused (value || advantages) head + per-branch dueling combine.

    Matmul operands are bf16; accumulation and all elementwise math are f32.
    Head layout (lanes): [0] = value, [1 : 1+sum(n_i)] = advantages, rest = zero padding.
    """
    # x arrives as f32; cast to bf16 on the VPU here (hidden under the MXU) instead of in the
    # wrapper (which would be a separate un-hidden XLA pass over x in HBM).
    x = x_ref[...].astype(jnp.bfloat16)                                      # (TB, obs)
    h1 = jnp.maximum(
        jnp.dot(x, w1_ref[...], preferred_element_type=jnp.float32) + b1_ref[...], 0.0)
    h2 = jnp.maximum(
        jnp.dot(h1.astype(jnp.bfloat16), w2_ref[...],
                preferred_element_type=jnp.float32) + b2_ref[...], 0.0)
    head = jnp.dot(h2.astype(jnp.bfloat16), wh_ref[...],
                   preferred_element_type=jnp.float32) + bh_ref[...]          # (TB, A_pad) f32

    value = head[:, 0:1]                                                      # (TB, 1)
    lane = lax.broadcasted_iota(jnp.int32, head.shape, 1)

    # Per-branch max, broadcast back into the packed lane layout via selects
    # (no concatenates, no sub-128 masked stores; q_ref gets one dense store).
    neg_inf = jnp.float32(-jnp.inf)
    max_b = jnp.zeros_like(head)
    off = 1
    for n in branch_sizes:
        in_branch = (lane >= off) & (lane < off + n)
        m = jnp.max(jnp.where(in_branch, head, neg_inf), axis=-1, keepdims=True)
        max_b = jnp.where(in_branch, m, max_b)
        off += n

    # Dueling combine: a_i - max(a_i) + value (padding lanes get harmless values, sliced away).
    q_ref[...] = (head - max_b + value).astype(q_ref.dtype)


def pack_params(params, action_space):
    """One-time prep: pack value||advantage heads and cast matmul weights to bf16.

    Do this once per parameter update, NOT per forward step, so the cast/concat cost
    (and the halved weight bytes) is amortized across calls.
    """
    w1, b1, w2, b2, wv, bv, wadv, badv = params
    hidden_2 = w2.shape[1]
    a_total = int(sum(action_space))
    a_pad = max(_LANES, _round_up(1 + a_total, _LANES))
    n_pad = a_pad - 1 - a_total
    wh = jnp.concatenate(
        [wv, wadv, jnp.zeros((hidden_2, n_pad), jnp.float32)], axis=1)
    bh = jnp.concatenate(
        [bv, badv, jnp.zeros((1, n_pad), jnp.float32)], axis=1)
    return (w1.astype(jnp.bfloat16), b1.astype(jnp.float32),
            w2.astype(jnp.bfloat16), b2.astype(jnp.float32),
            wh.astype(jnp.bfloat16), bh.astype(jnp.float32))


def _choose_batch_tile(B, batch_tile):
    """Batch tile selection.

    * Small/medium B: a single tile (the kernel is launch/latency-bound; more steps only
      add ~0.35 us per-step overhead), capped at batch_tile.
    * Large B: at least 2 sublane-aligned grid steps so the "parallel" batch axis can shard
      across v7x's 2 TensorCores, capped at batch_tile (default 1024) to bound the per-step
      VMEM footprint (~6-8 MiB at tb=1024, inside every generation's scoped-VMEM default).
    """
    if B < 512:
        return min(B, batch_tile)
    return min(batch_tile, _round_up(pl.cdiv(B, 2), 16))


def branching_q_forward(x, packed_params, action_space, *, batch_tile=1024,
                        out_dtype=jnp.float32):
    """Returns a list of per-branch Q arrays (squeezed), matching the PyTorch forward.

    `out_dtype=jnp.bfloat16` halves the q writeback stream (dominant at large B) if the
    consumer tolerates bf16; the default f32 matches the module's numerics.
    """
    w1, b1, w2, b2, wh, bh = packed_params
    B, obs = x.shape
    h1 = w1.shape[1]
    h2 = w2.shape[1]
    a_pad = wh.shape[1]

    tb = _choose_batch_tile(B, batch_tile)
    grid = (pl.cdiv(B, tb),)

    x = x.astype(jnp.float32)  # kernel casts to bf16 after the load; no extra HBM pass here.

    kernel = functools.partial(
        _bdq_kernel, branch_sizes=tuple(int(n) for n in action_space))

    def const(i):
        return (0, 0)

    q_bytes = jnp.dtype(out_dtype).itemsize
    flops = 2 * B * (obs * h1 + h1 * h2 + h2 * a_pad)
    bytes_accessed = (
        B * obs * 4                                # x (f32)
        + (obs * h1 + h1 * h2 + h2 * a_pad) * 2    # weights (bf16)
        + (h1 + h2 + a_pad) * 4                    # biases (f32)
        + B * a_pad * q_bytes)                     # q out

    q = pl.pallas_call(
        kernel,
        out_shape=jax.ShapeDtypeStruct((B, a_pad), out_dtype),
        grid=grid,
        in_specs=[
            pl.BlockSpec((tb, obs), lambda i: (i, 0)),   # x: tiled over batch
            pl.BlockSpec((obs, h1), const),              # weights/biases: VMEM-resident,
            pl.BlockSpec((1, h1), const),                # DMA'd once (constant index_map)
            pl.BlockSpec((h1, h2), const),
            pl.BlockSpec((1, h2), const),
            pl.BlockSpec((h2, a_pad), const),
            pl.BlockSpec((1, a_pad), const),
        ],
        out_specs=pl.BlockSpec((tb, a_pad), lambda i: (i, 0)),
        compiler_params=pltpu.CompilerParams(
            dimension_semantics=("parallel",),
            # >= v6e/v7x defaults, raises v5e's 16 MiB scoped default so the 1024-row tile
            # (f32 h1/h2 intermediates + double-buffered x/q) never forces spills.
            vmem_limit_bytes=32 * 1024 * 1024),
        cost_estimate=pl.CostEstimate(flops=flops, transcendentals=0,
                                      bytes_accessed=bytes_accessed),
    )(x, w1, b1, w2, b2, wh, bh)

    # Glue: per-branch split (advantages live at lanes [1, 1+sum(n_i))). squeeze mirrors
    # PyTorch `.squeeze()` (note: also drops the batch dim when B == 1, as PyTorch does).
    actions = []
    off = 1
    for n in action_space:
        actions.append(jnp.squeeze(q[:, off:off + n]))
        off += n
    return actions


def init_params(key, obs_size, action_space, hidden_1=512, hidden_2=256):
    """Deterministic PyTorch-Linear-style init: U(-1/sqrt(fan_in), 1/sqrt(fan_in))."""
    a_total = int(sum(action_space))
    ks = jax.random.split(key, 8)

    def lin(kw, kb, fan_in, fan_out):
        bound = 1.0 / jnp.sqrt(jnp.float32(fan_in))
        w = jax.random.uniform(kw, (fan_in, fan_out), jnp.float32, -bound, bound)
        b = jax.random.uniform(kb, (1, fan_out), jnp.float32, -bound, bound)
        return w, b

    w1, b1 = lin(ks[0], ks[1], obs_size, hidden_1)
    w2, b2 = lin(ks[2], ks[3], hidden_1, hidden_2)
    wv, bv = lin(ks[4], ks[5], hidden_2, 1)
    wadv, badv = lin(ks[6], ks[7], hidden_2, a_total)
    return (w1, b1, w2, b2, wv, bv, wadv, badv)


def _reference_forward(x, params, action_space):
    """Pure-JAX f32 reference of the PyTorch forward (for validation).

    Mirrors the spec exactly: per-branch `adv - adv.max(-1, keepdims=True) + value`
    (the given module subtracts the MAX, not the mean).
    """
    w1, b1, w2, b2, wv, bv, wadv, badv = params
    h1 = jnp.maximum(x @ w1 + b1, 0.0)
    h2 = jnp.maximum(h1 @ w2 + b2, 0.0)
    value = h2 @ wv + bv
    adv = h2 @ wadv + badv
    out, off = [], 0
    for n in action_space:
        a = adv[:, off:off + n]
        out.append(jnp.squeeze(a - jnp.max(a, axis=-1, keepdims=True) + value))
        off += n
    return out


def _check(actions, ref, batch, action_space):
    for a, r, n in zip(actions, ref, action_space):
        expect = (n,) if batch == 1 else (batch, n)
        assert a.shape == expect, (a.shape, expect)
        # bf16 matmul operands vs f32 reference -> loosened tolerance.
        assert jnp.allclose(a.astype(jnp.float32), r, atol=5e-2, rtol=5e-2), \
            "mismatch vs reference"


if __name__ == "__main__":
    # Small shapes consistent with the module: obs vector in, branched Q values out.
    obs_size = 32
    hidden_1, hidden_2 = 512, 256          # module defaults
    action_space = (3, 4, 5)               # three action branches

    key = jax.random.PRNGKey(0)
    k_x, k_p, k_x2 = jax.random.split(key, 3)
    # TODO(synk): PyTorch casts non-tensor inputs to float64; TPU path uses f32/bf16 throughout.

    params = init_params(k_p, obs_size, action_space, hidden_1, hidden_2)
    packed = pack_params(params, action_space)   # one-time prep, amortized across steps

    # Test 1: tiny batch, single tile (the canonical small-shape example).
    batch = 2
    x = jax.random.normal(k_x, (batch, obs_size), dtype=jnp.float32)
    actions = branching_q_forward(x, packed, action_space)
    actions = [jax.block_until_ready(a) for a in actions]
    _check(actions, _reference_forward(x, params, action_space), batch, action_space)

    # Test 2: B not a multiple of the batch tile -> multi-step grid with a partial last
    # block (exercises the masked-writeback path the review flagged as untested).
    batch2 = 40
    x2 = jax.random.normal(k_x2, (batch2, obs_size), dtype=jnp.float32)
    actions2 = branching_q_forward(x2, packed, action_space, batch_tile=16)
    actions2 = [jax.block_until_ready(a) for a in actions2]
    _check(actions2, _reference_forward(x2, params, action_space), batch2, action_space)

    print("KERNEL_OK")
</pallas_src>

<mosaic_0001>
module attributes {stable_mosaic.version = 11 : i64} {
  func.func @_bdq_kernel(%arg0: i32, %arg1: memref<2x32xf32, #tpu.memory_space<vmem>>, %arg2: memref<32x512xbf16, #tpu.memory_space<vmem>>, %arg3: memref<1x512xf32, #tpu.memory_space<vmem>>, %arg4: memref<512x256xbf16, #tpu.memory_space<vmem>>, %arg5: memref<1x256xf32, #tpu.memory_space<vmem>>, %arg6: memref<256x128xbf16, #tpu.memory_space<vmem>>, %arg7: memref<1x128xf32, #tpu.memory_space<vmem>>, %arg8: memref<2x128xf32, #tpu.memory_space<vmem>>) attributes {dimension_semantics = [#tpu.dimension_semantics<parallel>], iteration_bounds = array<i64: 1>, scalar_prefetch = 0 : i64, scratch_operands = 0 : i64, tpu.core_type = #tpu.core_type<tc>, window_params = [{transform_indices = @transform_0, window_bounds = array<i64: 2, 32>}, {pipeline_mode = #tpu.pipeline_mode<synchronous>, transform_indices = @transform_1, window_bounds = array<i64: 32, 512>}, {pipeline_mode = #tpu.pipeline_mode<synchronous>, transform_indices = @transform_2, window_bounds = array<i64: 1, 512>}, {pipeline_mode = #tpu.pipeline_mode<synchronous>, transform_indices = @transform_3, window_bounds = array<i64: 512, 256>}, {pipeline_mode = #tpu.pipeline_mode<synchronous>, transform_indices = @transform_4, window_bounds = array<i64: 1, 256>}, {pipeline_mode = #tpu.pipeline_mode<synchronous>, transform_indices = @transform_5, window_bounds = array<i64: 256, 128>}, {pipeline_mode = #tpu.pipeline_mode<synchronous>, transform_indices = @transform_6, window_bounds = array<i64: 1, 128>}, {transform_indices = @transform_7, window_bounds = array<i64: 2, 128>}]} {
    %c0 = arith.constant 0 : index
    %c0_0 = arith.constant 0 : index
    %0 = vector.load %arg1[%c0, %c0_0] : memref<2x32xf32, #tpu.memory_space<vmem>>, vector<2x32xf32>
    %1 = arith.truncf %0 : vector<2x32xf32> to vector<2x32xbf16>
    %c0_1 = arith.constant 0 : index
    %c0_2 = arith.constant 0 : index
    %2 = vector.load %arg2[%c0_1, %c0_2] : memref<32x512xbf16, #tpu.memory_space<vmem>>, vector<32x512xbf16>
    %cst = arith.constant dense<0.000000e+00> : vector<2x512xf32>
    %3 = tpu.matmul %1, %2, %cst {dimension_numbers = #tpu.dot_dimension_numbers<[1], [0], [0], [1], [0, 0, 1, 1], [], []>} : vector<2x32xbf16>, vector<32x512xbf16>, vector<2x512xf32> -> vector<2x512xf32>
    %c0_3 = arith.constant 0 : index
    %c0_4 = arith.constant 0 : index
    %4 = vector.load %arg3[%c0_3, %c0_4] : memref<1x512xf32, #tpu.memory_space<vmem>>, vector<1x512xf32>
    %5 = vector.broadcast %4 : vector<1x512xf32> to vector<2x512xf32>
    %6 = arith.addf %3, %5 : vector<2x512xf32>
    %cst_5 = arith.constant 0.000000e+00 : f32
    %7 = vector.broadcast %cst_5 : f32 to vector<2x512xf32>
    %8 = arith.maximumf %6, %7 : vector<2x512xf32>
    %9 = arith.truncf %8 : vector<2x512xf32> to vector<2x512xbf16>
    %c0_6 = arith.constant 0 : index
    %c0_7 = arith.constant 0 : index
    %10 = vector.load %arg4[%c0_6, %c0_7] : memref<512x256xbf16, #tpu.memory_space<vmem>>, vector<512x256xbf16>
    %cst_8 = arith.constant dense<0.000000e+00> : vector<2x256xf32>
    %11 = tpu.matmul %9, %10, %cst_8 {dimension_numbers = #tpu.dot_dimension_numbers<[1], [0], [0], [1], [0, 0, 1, 1], [], []>} : vector<2x512xbf16>, vector<512x256xbf16>, vector<2x256xf32> -> vector<2x256xf32>
    %c0_9 = arith.constant 0 : index
    %c0_10 = arith.constant 0 : index
    %12 = vector.load %arg5[%c0_9, %c0_10] : memref<1x256xf32, #tpu.memory_space<vmem>>, vector<1x256xf32>
    %13 = vector.broadcast %12 : vector<1x256xf32> to vector<2x256xf32>
    %14 = arith.addf %11, %13 : vector<2x256xf32>
    %cst_11 = arith.constant 0.000000e+00 : f32
    %15 = vector.broadcast %cst_11 : f32 to vector<2x256xf32>
    %16 = arith.maximumf %14, %15 : vector<2x256xf32>
    %17 = arith.truncf %16 : vector<2x256xf32> to vector<2x256xbf16>
    %c0_12 = arith.constant 0 : index
    %c0_13 = arith.constant 0 : index
    %18 = vector.load %arg6[%c0_12, %c0_13] : memref<256x128xbf16, #tpu.memory_space<vmem>>, vector<256x128xbf16>
    %cst_14 = arith.constant dense<0.000000e+00> : vector<2x128xf32>
    %19 = tpu.matmul %17, %18, %cst_14 {dimension_numbers = #tpu.dot_dimension_numbers<[1], [0], [0], [1], [0, 0, 1, 1], [], []>} : vector<2x256xbf16>, vector<256x128xbf16>, vector<2x128xf32> -> vector<2x128xf32>
    %c0_15 = arith.constant 0 : index
    %c0_16 = arith.constant 0 : index
    %20 = vector.load %arg7[%c0_15, %c0_16] : memref<1x128xf32, #tpu.memory_space<vmem>>, vector<1x128xf32>
    %21 = vector.broadcast %20 : vector<1x128xf32> to vector<2x128xf32>
    %22 = arith.addf %19, %21 : vector<2x128xf32>
    %23 = vector.extract_strided_slice %22 {offsets = [0, 0], sizes = [2, 1], strides = [1, 1]} : vector<2x128xf32> to vector<2x1xf32>
    %24 = tpu.iota {dimensions = array<i32: 1>} : vector<2x128xi32>
    %cst_17 = arith.constant 0.000000e+00 : f32
    %25 = vector.broadcast %cst_17 : f32 to vector<2x128xf32>
    %c1_i32 = arith.constant 1 : i32
    %26 = vector.broadcast %c1_i32 : i32 to vector<2x128xi32>
    %27 = arith.cmpi sge, %24, %26 : vector<2x128xi32>
    %c4_i32 = arith.constant 4 : i32
    %28 = vector.broadcast %c4_i32 : i32 to vector<2x128xi32>
    %29 = arith.cmpi slt, %24, %28 : vector<2x128xi32>
    %30 = arith.andi %27, %29 : vector<2x128xi1>
    %cst_18 = arith.constant 0xFF800000 : f32
    %31 = vector.broadcast %cst_18 : f32 to vector<2x128xf32>
    %32 = arith.select %30, %22, %31 : vector<2x128xi1>, vector<2x128xf32>
    %cst_19 = arith.constant dense<0xFF800000> : vector<2xf32>
    %33 = vector.multi_reduction <maximumf>, %32, %cst_19 [1] : vector<2x128xf32> to vector<2xf32>
    %34 = vector.shape_cast %33 : vector<2xf32> to vector<2x1xf32>
    %35 = vector.shape_cast %34 : vector<2x1xf32> to vector<2x1xf32>
    %36 = vector.broadcast %35 : vector<2x1xf32> to vector<2x128xf32>
    %37 = arith.select %30, %36, %25 : vector<2x128xi1>, vector<2x128xf32>
    %c4_i32_20 = arith.constant 4 : i32
    %38 = vector.broadcast %c4_i32_20 : i32 to vector<2x128xi32>
    %39 = arith.cmpi sge, %24, %38 : vector<2x128xi32>
    %c8_i32 = arith.constant 8 : i32
    %40 = vector.broadcast %c8_i32 : i32 to vector<2x128xi32>
    %41 = arith.cmpi slt, %24, %40 : vector<2x128xi32>
    %42 = arith.andi %39, %41 : vector<2x128xi1>
    %cst_21 = arith.constant 0xFF800000 : f32
    %43 = vector.broadcast %cst_21 : f32 to vector<2x128xf32>
    %44 = arith.select %42, %22, %43 : vector<2x128xi1>, vector<2x128xf32>
    %cst_22 = arith.constant dense<0xFF800000> : vector<2xf32>
    %45 = vector.multi_reduction <maximumf>, %44, %cst_22 [1] : vector<2x128xf32> to vector<2xf32>
    %46 = vector.shape_cast %45 : vector<2xf32> to vector<2x1xf32>
    %47 = vector.shape_cast %46 : vector<2x1xf32> to vector<2x1xf32>
    %48 = vector.broadcast %47 : vector<2x1xf32> to vector<2x128xf32>
    %49 = arith.select %42, %48, %37 : vector<2x128xi1>, vector<2x128xf32>
    %c8_i32_23 = arith.constant 8 : i32
    %50 = vector.broadcast %c8_i32_23 : i32 to vector<2x128xi32>
    %51 = arith.cmpi sge, %24, %50 : vector<2x128xi32>
    %c13_i32 = arith.constant 13 : i32
    %52 = vector.broadcast %c13_i32 : i32 to vector<2x128xi32>
    %53 = arith.cmpi slt, %24, %52 : vector<2x128xi32>
    %54 = arith.andi %51, %53 : vector<2x128xi1>
    %cst_24 = arith.constant 0xFF800000 : f32
    %55 = vector.broadcast %cst_24 : f32 to vector<2x128xf32>
    %56 = arith.select %54, %22, %55 : vector<2x128xi1>, vector<2x128xf32>
    %cst_25 = arith.constant dense<0xFF800000> : vector<2xf32>
    %57 = vector.multi_reduction <maximumf>, %56, %cst_25 [1] : vector<2x128xf32> to vector<2xf32>
    %58 = vector.shape_cast %57 : vector<2xf32> to vector<2x1xf32>
    %59 = vector.shape_cast %58 : vector<2x1xf32> to vector<2x1xf32>
    %60 = vector.broadcast %59 : vector<2x1xf32> to vector<2x128xf32>
    %61 = arith.select %54, %60, %49 : vector<2x128xi1>, vector<2x128xf32>
    %62 = arith.subf %22, %61 : vector<2x128xf32>
    %63 = vector.broadcast %23 : vector<2x1xf32> to vector<2x128xf32>
    %64 = arith.addf %62, %63 : vector<2x128xf32>
    %c0_26 = arith.constant 0 : index
    %c0_27 = arith.constant 0 : index
    %65 = vector.load %arg8[%c0_26, %c0_27] : memref<2x128xf32, #tpu.memory_space<vmem>>, vector<2x128xf32>
    tpu.vector_store %arg8[%c0_26, %c0_27], %64 {strides = array<i32>} : memref<2x128xf32, #tpu.memory_space<vmem>>, vector<2x128xf32>,
    return
  }
  func.func @transform_0(%arg0: i32) -> (i32, i32) {
    %c0_i32 = arith.constant 0 : i32
    %c0_i32_0 = arith.constant 0 : i32
    return %arg0, %c0_i32 : i32, i32
  }
  func.func @transform_1(%arg0: i32) -> (i32, i32) {
    %c0_i32 = arith.constant 0 : i32
    %c0_i32_0 = arith.constant 0 : i32
    %c0_i32_1 = arith.constant 0 : i32
    return %c0_i32, %c0_i32_0 : i32, i32
  }
  func.func @transform_2(%arg0: i32) -> (i32, i32) {
    %c0_i32 = arith.constant 0 : i32
    %c0_i32_0 = arith.constant 0 : i32
    %c0_i32_1 = arith.constant 0 : i32
    return %c0_i32, %c0_i32_0 : i32, i32
  }
  func.func @transform_3(%arg0: i32) -> (i32, i32) {
    %c0_i32 = arith.constant 0 : i32
    %c0_i32_0 = arith.constant 0 : i32
    %c0_i32_1 = arith.constant 0 : i32
    return %c0_i32, %c0_i32_0 : i32, i32
  }
  func.func @transform_4(%arg0: i32) -> (i32, i32) {
    %c0_i32 = arith.constant 0 : i32
    %c0_i32_0 = arith.constant 0 : i32
    %c0_i32_1 = arith.constant 0 : i32
    return %c0_i32, %c0_i32_0 : i32, i32
  }
  func.func @transform_5(%arg0: i32) -> (i32, i32) {
    %c0_i32 = arith.constant 0 : i32
    %c0_i32_0 = arith.constant 0 : i32
    %c0_i32_1 = arith.constant 0 : i32
    return %c0_i32, %c0_i32_0 : i32, i32
  }
  func.func @transform_6(%arg0: i32) -> (i32, i32) {
    %c0_i32 = arith.constant 0 : i32
    %c0_i32_0 = arith.constant 0 : i32
    %c0_i32_1 = arith.constant 0 : i32
    return %c0_i32, %c0_i32_0 : i32, i32
  }
  func.func @transform_7(%arg0: i32) -> (i32, i32) {
    %c0_i32 = arith.constant 0 : i32
    %c0_i32_0 = arith.constant 0 : i32
    return %arg0, %c0_i32 : i32, i32
  }
}

</mosaic_0001>

<bundles_post_ra>
// kernel: tpu_custom_call.1
= control target key start
LH: loop header
LB: loop body
LE: loop exit
PB: predicated region body
PF: predicated region fallthrough
CT: control target
= control target key end

     0   :  { %12 = vsyncpa [#allocation3], 0  ;;  %s1484_s0 = inlined_call_operand.hbm [shape: f32[2,32], index: 0, kind: input, shape index: {}]   ;;  %s1485_s1 = inlined_call_operand.hbm [shape: bf16[32,512], index: 1, kind: input, shape index: {}]   ;;  %s1486_s2 = inlined_call_operand.vmem [shape: f32[1,512], index: 2, kind: input, shape index: {}]   ;;  %s1487_s3 = inlined_call_operand.hbm [shape: bf16[512,256], index: 3, kind: input, shape index: {}]   ;;  %s1488_s4 = inlined_call_operand.vmem [shape: f32[1,256], index: 4, kind: input, shape index: {}]   ;;  %s1489_s5 = inlined_call_operand.hbm [shape: bf16[256,128], index: 5, kind: input, shape index: {}]   ;;  %s1490_s6 = inlined_call_operand.vmem [shape: f32[1,128], index: 6, kind: input, shape index: {}]   ;;  %s1491_s7 = inlined_call_operand.hbm [shape: f32[2,128], index: 7, kind: output, shape index: {}]  }
   0x1   :  { %13 = vsyncpa [#allocation6], 0 }
   0x2   :  { %14 = vsyncpa [#allocation9], 0 }
   0x3   :  { %15 = vsyncpa [#allocation4], 0  ;;  %s1329_s24 = smov [#allocation5]   ;;  %s1211_s28 = scalar_lea.hbm %s1485_s1, 1024 }
   0x4   :  { %s31_s25 = sshll.u32 %s1329_s24, 4  ;;  %p1212_p0 = scmp.ne.s32.totalorder %s1485_s1, %s1211_s28  ;;  %s32_s25 = int_to_ptr.vmem [resolvable:$true] %s31_s25 }
   0x5   :  { %p1215_p1 = scmp.lt.u32.totalorder %s1211_s28, %s1485_s1 }
   0x7   :  { %p1217_p2 = pnand %p1215_p1, %p1212_p0 }
   0x9   :  { %1220 = shalt.err (!%p1217_p2)
}
   0xa   :  { %s1221_s10 = scalar_lea.vmem %s32_s25, 1024  ;;  %p1226_p4 = scmp.lt.s32.totalorder %s32_s25, %s32_s25 }
   0xb   :  { %p1222_p3 = scmp.ne.s32.totalorder %s32_s25, %s1221_s10  ;;  %p1227_p5 = scmp.lt.s32.totalorder %s1221_s10, %s1221_s10 }
   0xd   :  { %p1228_p6 = por %p1227_p5, %p1226_p4 }
   0xf   :  { %p1229_p7 = pnand %p1228_p6, %p1222_p3 }
  0x11   :  { %1232 = shalt.err (!%p1229_p7)
}
  0x12   :  { %s1330_s11 = smov 256   ;;  %s1331_s12 = smov 16  }
  0x13   :  { %37 = dma.hbm_to_vmem [thread:$0]  %s1485_s1, 1024, %s32_s25, [#allocation6], %s1330_s11, %s1330_s11, %s1331_s12  }
  0x14   :  { %s1332_s15 = smov [#allocation2]   ;;  %s1333_s17 = smov [#allocation7]  }
  0x15   :  { %s22_s16 = sshll.u32 %s1332_s15, 4  ;;  %s45_s18 = sshll.u32 %s1333_s17, 4  ;;  %s23_s16 = int_to_ptr.vmem [resolvable:$true] %s22_s16  ;;  %s46_s18 = int_to_ptr.vmem [resolvable:$true] %s45_s18 }
  0x16   :  { %s1233_s21 = scalar_lea.hbm %s1484_s0, 32 }
  0x17   :  { %p1234_p8 = scmp.ne.s32.totalorder %s1484_s0, %s1233_s21  ;;  %p1237_p9 = scmp.lt.u32.totalorder %s1233_s21, %s1484_s0 }
  0x19   :  { %p1239_p10 = pnand %p1237_p9, %p1234_p8 }
  0x1b   :  { %1242 = shalt.err (!%p1239_p10)
}
  0x1c   :  { %s1243_s1 = scalar_lea.vmem %s23_s16, 32  ;;  %p1248_p12 = scmp.lt.s32.totalorder %s23_s16, %s23_s16 }
  0x1d   :  { %p1244_p11 = scmp.ne.s32.totalorder %s23_s16, %s1243_s1  ;;  %p1249_p13 = scmp.lt.s32.totalorder %s1243_s1, %s1243_s1 }
  0x1f   :  { %p1250_p0 = por %p1249_p13, %p1248_p12 }
  0x21   :  { %p1251_p1 = pnand %p1250_p0, %p1244_p11 }
  0x23   :  { %1254 = shalt.err (!%p1251_p1)
}
  0x24   :  { %25 = dma.hbm_to_vmem [thread:$0]  %s1484_s0, 32, %s23_s16, [#allocation3]  }
  0x25   :  { %s1255_s30 = scalar_lea.hbm %s1487_s3, 8192 }
  0x26   :  { %p1256_p2 = scmp.ne.s32.totalorder %s1487_s3, %s1255_s30  ;;  %p1259_p3 = scmp.lt.u32.totalorder %s1255_s30, %s1487_s3 }
  0x28   :  { %p1261_p4 = pnand %p1259_p3, %p1256_p2 }
  0x2a   :  { %1264 = shalt.err (!%p1261_p4)
}
  0x2b   :  { %s1265_s12 = scalar_lea.vmem %s46_s18, 8192  ;;  %p1270_p6 = scmp.lt.s32.totalorder %s46_s18, %s46_s18 }
  0x2c   :  { %p1266_p5 = scmp.ne.s32.totalorder %s46_s18, %s1265_s12  ;;  %p1271_p7 = scmp.lt.s32.totalorder %s1265_s12, %s1265_s12 }
  0x2e   :  { %p1272_p8 = por %p1271_p7, %p1270_p6 }
  0x30   :  { %p1273_p9 = pnand %p1272_p8, %p1266_p5 }
  0x32   :  { %1276 = shalt.err (!%p1273_p9)
}
  0x33   :  { %s1334_s0 = smov 128   ;;  %s1335_s13 = smov 8  }
  0x34   :  { %51 = dma.hbm_to_vmem [thread:$0]  %s1487_s3, 8192, %s46_s18, [#allocation6], %s1334_s0, %s1334_s0, %s1335_s13  }
  0x35   :  { %s1336_s16 = smov [#allocation8]   ;;  %s1277_s21 = scalar_lea.hbm %s1489_s5, 2048 }
  0x36   :  { %s59_s17 = sshll.u32 %s1336_s16, 4  ;;  %p1278_p10 = scmp.ne.s32.totalorder %s1489_s5, %s1277_s21  ;;  %s60_s17 = int_to_ptr.vmem [resolvable:$true] %s59_s17 }
  0x37   :  { %p1281_p11 = scmp.lt.u32.totalorder %s1277_s21, %s1489_s5 }
  0x39   :  { %p1283_p12 = pnand %p1281_p11, %p1278_p10 }
  0x3b   :  { %1286 = shalt.err (!%p1283_p12)
}
  0x3c   :  { %s1287_s1 = scalar_lea.vmem %s60_s17, 2048  ;;  %p1292_p0 = scmp.lt.s32.totalorder %s60_s17, %s60_s17 }
  0x3d   :  { %p1288_p13 = scmp.ne.s32.totalorder %s60_s17, %s1287_s1  ;;  %p1293_p1 = scmp.lt.s32.totalorder %s1287_s1, %s1287_s1 }
  0x3f   :  { %p1294_p2 = por %p1293_p1, %p1292_p0 }
  0x41   :  { %p1295_p3 = pnand %p1294_p2, %p1288_p13 }
  0x43   :  { %1298 = shalt.err (!%p1295_p3)
}
  0x44   :  { %s1337_s3 = smov 64   ;;  %s1338_s18 = smov 4  }
  0x45   :  { %65 = dma.hbm_to_vmem [thread:$0]  %s1489_s5, 2048, %s60_s17, [#allocation9], %s1337_s3, %s1337_s3, %s1338_s18  }
  0x46   :  { %1321 = dma.done.wait [#allocation3], 32  }
  0x47   :  { %1322 = vsyncadd [#allocation3], 4294967264 }
  0x48   :  { %1323 = dma.done.wait [#allocation6], 9216  }
  0x49   :  { %1324 = vsyncadd [#allocation6], 4294958080 }
  0x4a   :  { %1325 = dma.done.wait [#allocation9], 2048  }
  0x4b   :  { %1326 = vsyncadd [#allocation9], 4294965248  ;;  %v1339_v0 = vmov 0   ;;  %v1087_v1 = vld [vmem:[#allocation5 + $0x4] ss:$16 sps:$4 sm:$0xff]   ;;  %vm153_vm0 = vcmask 261120  }
  0x4c   :  { %189 = vmatprep.mubr.bf16.mxu0 %v1339_v0  ;;  %1085 = vset.pattern.permute.xlu1 %v1339_v0  ;;  %v1089_v2 = vld [vmem:[#allocation5] ss:$16 sps:$4 sm:$0xff]   ;;  %v1090_v3 = vld [vmem:[#allocation5 + $0x24] ss:$16 sps:$4 sm:$0xff]   ;;  %v81_v5 = vld [vmem:[#allocation2] sm:$0x3] }
  0x4d   :  { %1086 = vset.pattern.permute.xlu0 %v1339_v0  ;;  %157 = vmatprep.subr.bf16.mxu0 %v1087_v1  ;;  %v1092_v4 = vld [vmem:[#allocation5 + $0x20] ss:$16 sps:$4 sm:$0xff]   ;;  %v1095_v6 = vld [vmem:[#allocation5 + $0xc] ss:$16 sps:$4 sm:$0xff]   ;;  %v1093_v7 = vld [vmem:[#allocation5 + $0x8] ss:$16 sps:$4 sm:$0xff]   ;;  %v82_v8 = vpack.c.bf16 %v81_v5, %v81_v5 }
  0x4e   :  { %158 = vmatpush1.bf16.msra.mxu0 %v1089_v2  ;;  %v1099_v9 = vld [vmem:[#allocation7 + $0x4] ss:$8 sps:$4 sm:$0xff]   ;;  %v1101_v10 = vld [vmem:[#allocation7] ss:$8 sps:$4 sm:$0xff]   ;;  %v1102_v11 = vld [vmem:[#allocation7 + $0x14] ss:$8 sps:$4 sm:$0xff]  }
  0x4f   :  { %159 = vmatprep.subr.bf16.mxu0 %v1090_v3  ;;  %v1098_v12 = vld [vmem:[#allocation5 + $0x2c] ss:$16 sps:$4 sm:$0xff]   ;;  %643 = vmatprep.subr.bf16.mxu1 %v1099_v9  ;;  %v1104_v13 = vld [vmem:[#allocation7 + $0x10] ss:$8 sps:$4 sm:$0xff]   ;;  %v1110_v17 = vld [vmem:[#allocation7 + $0x20] ss:$8 sps:$4 sm:$0xff]  }
  0x50   :  { %644 = vmatpush1.bf16.msra.mxu1 %v1101_v10  ;;  %v1105_v14 = vld [vmem:[#allocation7 + $0x24] ss:$8 sps:$4 sm:$0xff]   ;;  %v1096_v15 = vld [vmem:[#allocation5 + $0x28] ss:$16 sps:$4 sm:$0xff]   ;;  %v1111_v18 = vld [vmem:[#allocation7 + $0x34] ss:$8 sps:$4 sm:$0xff]  }
  0x51   :  { %645 = vmatprep.subr.bf16.mxu1 %v1102_v11  ;;  %v1109_v16 = vld [vmem:[#allocation7 + $0x104] ss:$8 sps:$4 sm:$0xff]   ;;  %v1107_v19 = vld [vmem:[#allocation7 + $0x100] ss:$8 sps:$4 sm:$0xff]   ;;  %v1115_v20 = vld [vmem:[#allocation7 + $0x114] ss:$8 sps:$4 sm:$0xff]  }
  0x52   :  { %160 = vmatpush1.bf16.msra.mxu0 %v1092_v4  ;;  %v1116_v21 = vld [vmem:[#allocation7 + $0x30] ss:$8 sps:$4 sm:$0xff]   ;;  %v1117_v22 = vld [vmem:[#allocation7 + $0x44] ss:$8 sps:$4 sm:$0xff]   ;;  %v1122_v25 = vld [vmem:[#allocation7 + $0x40] ss:$8 sps:$4 sm:$0xff]  }
  0x53   :  { %198 = vmatprep.subr.bf16.mxu0 %v1095_v6  ;;  %v1113_v23 = vld [vmem:[#allocation7 + $0x110] ss:$8 sps:$4 sm:$0xff]   ;;  %v1121_v24 = vld [vmem:[#allocation7 + $0x124] ss:$8 sps:$4 sm:$0xff]   ;;  %v1123_v26 = vld [vmem:[#allocation7 + $0x54] ss:$8 sps:$4 sm:$0xff]  }
  0x54   :  { %646 = vmatpush1.bf16.msra.mxu1 %v1104_v13  ;;  %v1119_v27 = vld [vmem:[#allocation7 + $0x120] ss:$8 sps:$4 sm:$0xff]   ;;  %v1127_v28 = vld [vmem:[#allocation7 + $0x134] ss:$8 sps:$4 sm:$0xff]   ;;  %v1128_v29 = vld [vmem:[#allocation7 + $0x50] ss:$8 sps:$4 sm:$0xff]  }
  0x55   :  { %964 = vmatmul.mubr.msk.bf16.vlgmr.msra.gmra.mrb[0].mxu0 %vm153_vm0, %v82_v8  ;;  %647 = vmatprep.subr.bf16.mxu1 %v1105_v14  ;;  %v1129_v30 = vld [vmem:[#allocation7 + $0x64] ss:$8 sps:$4 sm:$0xff]   ;;  %v1125_v31 = vld [vmem:[#allocation7 + $0x130] ss:$8 sps:$4 sm:$0xff]   ;;  %v1134_v33 = vld [vmem:[#allocation7 + $0x60] ss:$8 sps:$4 sm:$0xff]  }
  0x56   :  { %199 = vmatpush1.bf16.msra.mxu0 %v1093_v7  ;;  %230 = vmatprep.mubr.bf16.mxu0 %v1339_v0  ;;  %v1133_v32 = vld [vmem:[#allocation7 + $0x144] ss:$8 sps:$4 sm:$0xff]   ;;  %v1135_v34 = vld [vmem:[#allocation7 + $0x74] ss:$8 sps:$4 sm:$0xff]   ;;  %v1131_v35 = vld [vmem:[#allocation7 + $0x140] ss:$8 sps:$4 sm:$0xff]  }
  0x57   :  { %200 = vmatprep.subr.bf16.mxu0 %v1098_v12  ;;  %v1139_v36 = vld [vmem:[#allocation7 + $0x154] ss:$8 sps:$4 sm:$0xff]   ;;  %v1140_v37 = vld [vmem:[#allocation7 + $0x70] ss:$8 sps:$4 sm:$0xff]   ;;  %v1141_v38 = vld [vmem:[#allocation7 + $0x84] ss:$8 sps:$4 sm:$0xff]   ;;  %v93_v12 = vlaneseq }
  0x58   :  { %648 = vmatpush1.bf16.msra.mxu1 %v1110_v17  ;;  %v1137_v39 = vld [vmem:[#allocation7 + $0x150] ss:$8 sps:$4 sm:$0xff]   ;;  %v1145_v40 = vld [vmem:[#allocation7 + $0x164] ss:$8 sps:$4 sm:$0xff]   ;;  %v1146_v41 = vld [vmem:[#allocation7 + $0x80] ss:$8 sps:$4 sm:$0xff]  }
  0x59   :  { %649 = vmatprep.subr.bf16.mxu1 %v1111_v18  ;;  %v1147_v42 = vld [vmem:[#allocation7 + $0x94] ss:$8 sps:$4 sm:$0xff]   ;;  %v1143_v43 = vld [vmem:[#allocation7 + $0x160] ss:$8 sps:$4 sm:$0xff]   ;;  %v1152_v45 = vld [vmem:[#allocation7 + $0x90] ss:$8 sps:$4 sm:$0xff]  }
  0x5a   :  { %201 = vmatpush1.bf16.msra.mxu0 %v1096_v15  ;;  %v1151_v44 = vld [vmem:[#allocation7 + $0x174] ss:$8 sps:$4 sm:$0xff]   ;;  %v1153_v46 = vld [vmem:[#allocation7 + $0xa4] ss:$8 sps:$4 sm:$0xff]   ;;  %v1149_v47 = vld [vmem:[#allocation7 + $0x170] ss:$8 sps:$4 sm:$0xff]  }
  0x5b   :  { %684 = vmatprep.subr.bf16.mxu0 %v1109_v16  ;;  %v1157_v48 = vld [vmem:[#allocation7 + $0x184] ss:$8 sps:$4 sm:$0xff]   ;;  %v1158_v49 = vld [vmem:[#allocation7 + $0xa0] ss:$8 sps:$4 sm:$0xff]   ;;  %v1159_v50 = vld [vmem:[#allocation7 + $0xb4] ss:$8 sps:$4 sm:$0xff]  }
  0x5c   :  { %650 = vmatpush1.bf16.msra.mxu1 %v1116_v21  ;;  %v1155_v51 = vld [vmem:[#allocation7 + $0x180] ss:$8 sps:$4 sm:$0xff]   ;;  %v1163_v52 = vld [vmem:[#allocation7 + $0x194] ss:$8 sps:$4 sm:$0xff]   ;;  %v1164_v53 = vld [vmem:[#allocation7 + $0xb0] ss:$8 sps:$4 sm:$0xff]  }
  0x5d   :  { %965 = vmatmul.mubr.msk.bf16.vlgmr.msra.gmra.mrb[4].mxu0 %vm153_vm0, %v82_v8  ;;  %651 = vmatprep.subr.bf16.mxu1 %v1117_v22  ;;  %v1165_v54 = vld [vmem:[#allocation7 + $0xc4] ss:$8 sps:$4 sm:$0xff]   ;;  %v1161_v55 = vld [vmem:[#allocation7 + $0x190] ss:$8 sps:$4 sm:$0xff]   ;;  %v1170_v57 = vld [vmem:[#allocation7 + $0xc0] ss:$8 sps:$4 sm:$0xff]  }
  0x5e   :  { %685 = vmatpush1.bf16.msra.mxu0 %v1107_v19  ;;  %v1169_v56 = vld [vmem:[#allocation7 + $0x1a4] ss:$8 sps:$4 sm:$0xff]   ;;  %v1171_v58 = vld [vmem:[#allocation7 + $0xd4] ss:$8 sps:$4 sm:$0xff]   ;;  %v1167_v59 = vld [vmem:[#allocation7 + $0x1a0] ss:$8 sps:$4 sm:$0xff]  }
  0x5f   :  { %686 = vmatprep.subr.bf16.mxu0 %v1115_v20  ;;  %v1175_v60 = vld [vmem:[#allocation7 + $0x1b4] ss:$8 sps:$4 sm:$0xff]   ;;  %v1176_v61 = vld [vmem:[#allocation7 + $0xd0] ss:$8 sps:$4 sm:$0xff]   ;;  %v1177_v63 = vld [vmem:[#allocation7 + $0xe4] ss:$8 sps:$4 sm:$0xff]  }
  0x60   :  { %652 = vmatpush1.bf16.msra.mxu1 %v1122_v25  ;;  %v1173_v62 = vld [vmem:[#allocation7 + $0x1b0] ss:$8 sps:$4 sm:$0xff]   ;;  %v1181_v0 = vld [vmem:[#allocation7 + $0x1c4] ss:$8 sps:$4 sm:$0xff]   ;;  %v1179_v1 = vld [vmem:[#allocation7 + $0x1c0] ss:$8 sps:$4 sm:$0xff]  }
  0x61   :  { %653 = vmatprep.subr.bf16.mxu1 %v1123_v26  ;;  %v1182_v2 = vld [vmem:[#allocation7 + $0xe0] ss:$8 sps:$4 sm:$0xff]   ;;  %v1183_v3 = vld [vmem:[#allocation7 + $0xf4] ss:$8 sps:$4 sm:$0xff]   ;;  %v1185_v5 = vld [vmem:[#allocation7 + $0x1d0] ss:$8 sps:$4 sm:$0xff]  }
  0x62   :  { %687 = vmatpush1.bf16.msra.mxu0 %v1113_v23  ;;  %v1187_v4 = vld [vmem:[#allocation7 + $0x1d4] ss:$8 sps:$4 sm:$0xff]   ;;  %v1188_v6 = vld [vmem:[#allocation7 + $0xf0] ss:$8 sps:$4 sm:$0xff]   ;;  %v1191_v7 = vld [vmem:[#allocation7 + $0x1e4] ss:$8 sps:$4 sm:$0xff]  }
  0x63   :  { %688 = vmatprep.subr.bf16.mxu0 %v1121_v24  ;;  %v1189_v8 = vld [vmem:[#allocation7 + $0x1e0] ss:$8 sps:$4 sm:$0xff]   ;;  %v1194_v9 = vld [vmem:[#allocation7 + $0x1f4] ss:$8 sps:$4 sm:$0xff]   ;;  %v1192_v10 = vld [vmem:[#allocation7 + $0x1f0] ss:$8 sps:$4 sm:$0xff]  }
  0x64   :  { %654 = vmatpush1.bf16.msra.mxu1 %v1128_v29  ;;  %v1195_v11 = vld [vmem:[#allocation8 + $0x40] sm:$0xff]   ;;  %v1432_v13 = vshrl.u32 %v93_v12, 7  ;;  %v91_v15 = vld [vmem:[%s1486_s2] sm:$0xf]  ;;  %vm910_vm9 = vcmask 1041408  }
  0x65   :  { %655 = vmatprep.subr.bf16.mxu1 %v1129_v30 }
  0x66   :  { %689 = vmatpush1.bf16.msra.mxu0 %v1119_v27  ;;  %v95_v14 = vsub.s32 0, %v1432_v13  ;;  %v99_v16 = vsub.s32 1, %v1432_v13  ;;  %v103_v22 = vsub.s32 2, %v1432_v13  ;;  %v107_v25 = vsub.s32 3, %v1432_v13 }
  0x67   :  { %690 = vmatprep.subr.bf16.mxu0 %v1127_v28 }
  0x68   :  { %656 = vmatpush1.bf16.msra.mxu1 %v1134_v33  ;;  %v96_v17 = vrot.slane %v91_v15, %v95_v14  ;;  %v100_v18 = vrot.slane %v91_v15, %v99_v16  ;;  %v104_v29 = vrot.slane %v91_v15, %v103_v22 }
  0x69   :  { %657 = vmatprep.subr.bf16.mxu1 %v1135_v34  ;;  %v1197_v34 = vld [vmem:[#allocation8 + $0x48] sm:$0xff]  }
  0x6a   :  { %691 = vmatpush1.bf16.msra.mxu0 %v1125_v31  ;;  %v108_v31 = vrot.slane %v91_v15, %v107_v25 }
  0x6b   :  { %692 = vmatprep.subr.bf16.mxu0 %v1133_v32  ;;  %v1196_v32 = vld [vmem:[#allocation8] sm:$0xff]  }
  0x6c   :  { %658 = vmatpush1.bf16.msra.mxu1 %v1140_v37 }
  0x6d   :  { %659 = vmatprep.subr.bf16.mxu1 %v1141_v38 }
  0x6e   :  { %693 = vmatpush1.bf16.msra.mxu0 %v1131_v35 }
  0x6f   :  { %694 = vmatprep.subr.bf16.mxu0 %v1139_v36 }
  0x70   :  { %660 = vmatpush1.bf16.msra.mxu1 %v1146_v41 }
  0x71   :  { %661 = vmatprep.subr.bf16.mxu1 %v1147_v42 }
  0x72   :  { %695 = vmatpush1.bf16.msra.mxu0 %v1137_v39 }
  0x73   :  { %696 = vmatprep.subr.bf16.mxu0 %v1145_v40  ;;  %v1198_v40 = vld [vmem:[#allocation8 + $0x8] sm:$0xff]  }
  0x74   :  { %662 = vmatpush1.bf16.msra.mxu1 %v1152_v45 }
  0x75   :  { %663 = vmatprep.subr.bf16.mxu1 %v1153_v46  ;;  %v1200_v46 = vld [vmem:[#allocation8 + $0x10] sm:$0xff]  }
  0x76   :  { %697 = vmatpush1.bf16.msra.mxu0 %v1143_v43  ;;  %v1199_v43 = vld [vmem:[#allocation8 + $0x50] sm:$0xff]  }
  0x77   :  { %698 = vmatprep.subr.bf16.mxu0 %v1151_v44 }
  0x78   :  { %664 = vmatpush1.bf16.msra.mxu1 %v1158_v49  ;;  %v1202_v49 = vld [vmem:[#allocation8 + $0x18] sm:$0xff]  }
  0x79   :  { %665 = vmatprep.subr.bf16.mxu1 %v1159_v50  ;;  %v1203_v50 = vld [vmem:[#allocation8 + $0x60] sm:$0xff]  }
  0x7a   :  { %699 = vmatpush1.bf16.msra.mxu0 %v1149_v47 }
  0x7b   :  { %700 = vmatprep.subr.bf16.mxu0 %v1157_v48  ;;  %v1201_v48 = vld [vmem:[#allocation8 + $0x58] sm:$0xff]  }
  0x7c   :  { %666 = vmatpush1.bf16.msra.mxu1 %v1164_v53  ;;  %v1206_v53 = vld [vmem:[#allocation8 + $0x28] sm:$0xff]  }
  0x7d   :  { %667 = vmatprep.subr.bf16.mxu1 %v1165_v54  ;;  %v1207_v54 = vld [vmem:[#allocation8 + $0x70] sm:$0xff]  }
  0x7e   :  { %701 = vmatpush1.bf16.msra.mxu0 %v1155_v51  ;;  %v1204_v51 = vld [vmem:[#allocation8 + $0x20] sm:$0xff]  }
  0x7f   :  { %702 = vmatprep.subr.bf16.mxu0 %v1163_v52  ;;  %v1205_v52 = vld [vmem:[#allocation8 + $0x68] sm:$0xff]  }
  0x80   :  { %668 = vmatpush1.bf16.msra.mxu1 %v1170_v57  ;;  %v1210_v57 = vld [vmem:[#allocation8 + $0x38] sm:$0xff]  }
  0x81   :  { %669 = vmatprep.subr.bf16.mxu1 %v1171_v58  ;;  %v311_v58 = vld [vmem:[%s1488_s4] sm:$0x3] }
  0x82   :  { %703 = vmatpush1.bf16.msra.mxu0 %v1161_v55  ;;  %v1208_v55 = vld [vmem:[#allocation8 + $0x30] sm:$0xff]  }
  0x83   :  { %704 = vmatprep.subr.bf16.mxu0 %v1169_v56  ;;  %v1209_v56 = vld [vmem:[#allocation8 + $0x78] sm:$0xff]  }
  0x84   :  { %670 = vmatpush1.bf16.msra.mxu1 %v1176_v61 }
  0x85   :  { %671 = vmatprep.subr.bf16.mxu1 %v1177_v63 }
  0x86   :  { %705 = vmatpush1.bf16.msra.mxu0 %v1167_v59 }
  0x87   :  { %706 = vmatprep.subr.bf16.mxu0 %v1175_v60 }
  0x88   :  { %672 = vmatpush1.bf16.msra.mxu1 %v1182_v2 }
  0x89   :  { %673 = vmatprep.subr.bf16.mxu1 %v1183_v3 }
  0x8a   :  { %707 = vmatpush1.bf16.msra.mxu0 %v1173_v62  ;;  %v316_v62 = vrot.slane %v311_v58, %v95_v14  ;;  %v905_v14 = vand.u32 127, %v93_v12 }
  0x8b   :  { %708 = vmatprep.subr.bf16.mxu0 %v1181_v0  ;;  %v320_v0 = vrot.slane %v311_v58, %v99_v16  ;;  %v1030_v16 = vld [vmem:[%s1490_s6] ss:$0 sm:$0xff]  ;;  %s1340_s6 = smov [#allocation10]  }
  0x8c   :  { %674 = vmatpush1.bf16.msra.mxu1 %v1188_v6  ;;  %vm923_vm1 = vcmp.ge.s32.totalorder %v905_v14, 8  ;;  %vm924_vm2 = vcmp.lt.s32.totalorder %v905_v14, 13  ;;  %vm906_vm3 = vcmp.ge.s32.totalorder %v905_v14, 1  ;;  %vm907_vm4 = vcmp.lt.s32.totalorder %v905_v14, 4  ;;  %s945_s8 = sshll.u32 %s1340_s6, 4  ;;  %s946_s8 = int_to_ptr.vmem [resolvable:$true] %s945_s8 }
  0x8d   :  { %1047 = vmatprep.subr.bf16.mxu1 %v1195_v11  ;;  %vm1456_vm5 = vmand %vm923_vm1, %vm924_vm2  ;;  %vm915_vm6 = vcmp.ge.s32.totalorder %v905_v14, 4  ;;  %vm916_vm7 = vcmp.lt.s32.totalorder %v905_v14, 8  ;;  %s1299_s9 = scalar_lea.vmem %s946_s8, 32  ;;  %p1304_p5 = scmp.lt.s32.totalorder %s946_s8, %s946_s8 }
  0x8e   :  { %709 = vmatpush1.bf16.msra.mxu0 %v1179_v1  ;;  %vm1460_vm8 = vmand %vm906_vm3, %vm907_vm4  ;;  %p1300_p4 = scmp.ne.s32.totalorder %s946_s8, %s1299_s9  ;;  %p1305_p6 = scmp.lt.s32.totalorder %s1299_s9, %s1299_s9 }
  0x8f   :  { %710 = vmatprep.subr.bf16.mxu0 %v1187_v4  ;;  %vm917_vm10 = vmand %vm915_vm6, %vm916_vm7 }
  0x90   :  { %p1306_p7 = por %p1305_p6, %p1304_p5 }
  0x92   :  { %711 = vmatpush1.bf16.msra.mxu0 %v1185_v5  ;;  %p1307_p8 = pnand %p1306_p7, %p1300_p4 }
  0x93   :  { %712 = vmatprep.subr.bf16.mxu0 %v1191_v7 }
  0x96   :  { %713 = vmatpush1.bf16.msra.mxu0 %v1189_v8 }
  0x97   :  { %714 = vmatprep.subr.bf16.mxu0 %v1194_v9 }
  0x9a   :  { %715 = vmatpush1.bf16.msra.mxu0 %v1192_v10 }
 0x128   :  { %v191_v19 = vpop.f32.mrb[0].mxu0 }
 0x129   :  { %v192_v20 = vadd.f32 %v191_v19, %v96_v17  ;;  %v193_v21 = vpop.f32.mrb[1].mxu0 }
 0x12a   :  { %v194_v23 = vadd.f32 %v193_v21, %v100_v18  ;;  %v195_v24 = vpop.f32.mrb[2].mxu0 }
 0x12b   :  { %v239_v26 = vmax.f32 %v192_v20, 0.0  ;;  %v196_v27 = vpop.f32.mrb[3].mxu0 }
 0x12c   :  { %v240_v28 = vmax.f32 %v194_v23, 0.0 }
 0x12d   :  { %v243_v33 = vpack.c.bf16 %v239_v26, %v239_v26 }
 0x12e   :  { %v244_v30 = vpack.c.bf16 %v240_v28, %v240_v28 }
 0x130   :  { %v232_v35 = vpop.f32.mrb[4].mxu0  ;;  %675 = vmatprep.mubr.bf16.mxu1 %v244_v30 }
 0x131   :  { %v233_v36 = vadd.f32 %v232_v35, %v104_v29  ;;  %v234_v37 = vpop.f32.mrb[5].mxu0  ;;  %676 = vmatmul.mubr.bf16.vlgmr.msra.gmra.mrb[0].mxu1 %v243_v33 }
 0x132   :  { %v235_v38 = vadd.f32 %v234_v37, %v108_v31  ;;  %v236_v39 = vpop.f32.mrb[6].mxu0  ;;  %1048 = vmatpush3.bf16.msra.mxu1 %v1196_v32 }
 0x133   :  { %v241_v41 = vmax.f32 %v233_v36, 0.0  ;;  %v237_v42 = vpop.f32.mrb[7].mxu0  ;;  %1049 = vmatprep.subr.bf16.mxu1 %v1197_v34 }
 0x134   :  { %v242_v44 = vmax.f32 %v235_v38, 0.0 }
 0x135   :  { %v245_v47 = vpack.c.bf16 %v241_v41, %v241_v41 }
 0x136   :  { %v246_v45 = vpack.c.bf16 %v242_v44, %v242_v44  ;;  %1050 = vmatpush3.bf16.msra.mxu1 %v1198_v40 }
 0x137   :  { %1051 = vmatprep.subr.bf16.mxu1 %v1199_v43 }
 0x138   :  { %716 = vmatprep.mubr.bf16.mxu0 %v246_v45 }
 0x139   :  { %717 = vmatmul.mubr.bf16.vlgmr.msra.gmra.mrb[8].mxu0 %v245_v47 }
 0x13a   :  { %1052 = vmatpush3.bf16.msra.mxu1 %v1200_v46 }
 0x13b   :  { %1053 = vmatprep.subr.bf16.mxu1 %v1201_v48 }
 0x13e   :  { %1054 = vmatpush3.bf16.msra.mxu1 %v1202_v49 }
 0x13f   :  { %1055 = vmatprep.subr.bf16.mxu1 %v1203_v50 }
 0x142   :  { %1056 = vmatpush3.bf16.msra.mxu1 %v1204_v51 }
 0x143   :  { %1057 = vmatprep.subr.bf16.mxu1 %v1205_v52 }
 0x146   :  { %1058 = vmatpush3.bf16.msra.mxu1 %v1206_v53 }
 0x147   :  { %1059 = vmatprep.subr.bf16.mxu1 %v1207_v54 }
 0x14a   :  { %1060 = vmatpush3.bf16.msra.mxu1 %v1208_v55 }
 0x14b   :  { %1061 = vmatprep.subr.bf16.mxu1 %v1209_v56 }
 0x14e   :  { %1062 = vmatpush3.bf16.msra.mxu1 %v1210_v57 }
 0x204   :  { %v677_v59 = vpop.f32.mrb[0].mxu1 }
 0x205   :  { %v679_v60 = vpop.f32.mrb[1].mxu1  ;;  %v678_v1 = vadd.f32 %v677_v59, %v316_v62 }
 0x206   :  { %v681_v61 = vpop.f32.mrb[2].mxu1  ;;  %v680_v2 = vadd.f32 %v679_v60, %v320_v0 }
 0x207   :  { %v682_v63 = vpop.f32.mrb[3].mxu1 }
 0x20c   :  { %v718_v3 = vpop.f32.mrb[8].mxu0 }
 0x20d   :  { %v719_v4 = vadd.f32 %v718_v3, %v678_v1  ;;  %v720_v5 = vpop.f32.mrb[9].mxu0 }
 0x20e   :  { %v721_v6 = vadd.f32 %v720_v5, %v680_v2  ;;  %v722_v7 = vpop.f32.mrb[10].mxu0 }
 0x20f   :  { %v725_v8 = vmax.f32 %v719_v4, 0.0  ;;  %v723_v9 = vpop.f32.mrb[11].mxu0 }
 0x210   :  { %v726_v10 = vmax.f32 %v721_v6, 0.0 }
 0x211   :  { %v727_v15 = vpack.c.bf16 %v725_v8, %v725_v8 }
 0x212   :  { %v728_v11 = vpack.c.bf16 %v726_v10, %v726_v10 }
 0x214   :  { %896 = vmatprep.mubr.bf16.mxu1 %v728_v11 }
 0x215   :  { %897 = vmatmul.mubr.bf16.vlgmr.msra.gmra.mrb[4].mxu1 %v727_v15 }
 0x2e8   :  { %v1063_v13 = vpop.f32.mrb[4].mxu1 }
 0x2e9   :  { %v1064_v17 = vpop.f32.mrb[5].mxu1 }
 0x2ea   :  { %v1065_v18 = vadd.f32 %v1064_v17, %v1063_v13  ;;  %v1066_v19 = vpop.f32.mrb[6].mxu1 }
 0x2eb   :  { %v1067_v21 = vpop.f32.mrb[7].mxu1 }
 0x2ec   :  { %v899_v22 = vadd.f32 %v1065_v18, %v1030_v16 }
 0x2ee   :  { %v926_v23 = vsel %vm1456_vm5, %v899_v22, -inf  ;;  %v909_v24 = vsel %vm1460_vm8, %v899_v22, -inf  ;;  %v918_v27 = vsel %vm917_vm10, %v899_v22, -inf }
 0x2ef   :  { %v927_v25 = vsel %vm910_vm9, %v926_v23, -inf  ;;  %v911_v26 = vsel %vm910_vm9, %v909_v24, -inf  ;;  %v919_v28 = vsel %vm910_vm9, %v918_v27, -inf }
 0x2f0   :  { %928 = vmax.xlane.f32.xlu1 %v927_v25  ;;  %912 = vmax.xlane.f32.xlu0 %v911_v26 }
 0x2f4   :  { %920 = vmax.xlane.f32.xlu0 %v919_v28 }
 0x301   :  { %934 = vperm.xlu1 %1085, %v899_v22  }
 0x37d   :  { %v913_v29 = vpop.xlane.xlu0 %912  ;;  %v929_v30 = vpop.xlane.xlu1 %928 }
 0x37e   :  { %v914_v31 = vsel %vm1460_vm8, %v913_v29, 0.0 }
 0x381   :  { %v921_v32 = vpop.xlane.xlu0 %920  ;;  %v935_v36 = vpop.permute.xlu1 %934 }
 0x382   :  { %v922_v33 = vsel %vm917_vm10, %v921_v32, %v914_v31 }
 0x383   :  { %v930_v34 = vsel %vm1456_vm5, %v929_v30, %v922_v33 }
 0x384   :  { %v931_v35 = vsub.f32 %v899_v22, %v930_v34 }
 0x386   :  { %v937_v37 = vadd.f32 %v935_v36, %v931_v35 }
 0x388   :  { %938 = vst [vmem:[#allocation10] sm:$0x3] %v937_v37 }
 0x389   :  { %1310 = shalt.err (!%p1307_p8)
}
 0x38a   :  { %s1311_s12 = scalar_lea.hbm %s1491_s7, 32 }
 0x38b   :  { %p1312_p9 = scmp.ne.s32.totalorder %s1491_s7, %s1311_s12  ;;  %p1315_p10 = scmp.lt.u32.totalorder %s1311_s12, %s1491_s7 }
 0x38d   :  { %p1317_p11 = pnand %p1315_p10, %p1312_p9 }
 0x38f   :  { %1320 = shalt.err (!%p1317_p11)
}
 0x390   :  { %948 = dma.vmem_to_hbm [thread:$0]  %s946_s8, 32, %s1491_s7, [#allocation4]  }
 0x391   :  { %1327 = dma.done.wait [#allocation4], 32  }
 0x392   :  { %1328 = vsyncadd [#allocation4], 4294967264 }
 0x393   :  { %952 = vsyncpa [#allocation3], 1 }
 0x394   :  { %953 = vsyncpa [#allocation6], 1 }
 0x395   :  { %954 = vsyncpa [#allocation9], 1 }
 0x396   :  { %955 = vsyncpa [#allocation4], 1 }

</bundles_post_ra>
